<compile_context>
chip_gen: v7x
topology: tpu7x:2x2x1
jax: 0.10.0
libtpu: 0.0.40
codegen_flags: <defaults>
</compile_context>

<pallas_src>
import math
from dataclasses import dataclass

import jax
import jax.numpy as jnp
from jax.experimental import pallas as pl
from jax.experimental.pallas import tpu as pltpu


# ---------------------------------------------------------------------------
# Config
# ---------------------------------------------------------------------------
@dataclass
class Zamba2Config:
    hidden_size: int = 32
    num_attention_heads: int = 4
    num_key_value_heads: int = 2
    attention_dropout: float = 0.0
    rope_theta: float = 10000.0
    max_position_embeddings: int = 4096
    use_long_context: bool = False
    use_mem_rope: bool = True
    use_shared_attention_lora: bool = False


# ---------------------------------------------------------------------------
# Tiling helpers
# ---------------------------------------------------------------------------
def _round_up(x, m):
    return ((x + m - 1) // m) * m


def _pick_tile(dim, candidates):
    """Largest candidate that evenly divides `dim`, else the full dim
    (a full-extent block always satisfies the (8,128) rule)."""
    for c in candidates:
        if dim % c == 0:
            return c
    return dim


def _choose_seq_tile(S, H, Hkv, D):
    """Sequence tile for the attention / prep kernels.

    Kept under a ~24 MiB per-step estimate so the pipeline stays inside v7x's
    32 MiB scoped-VMEM default (v5e/v6e have more headroom; a 512-vs-1024
    sweep on v6e is possible after this, see review)."""
    budget = 24 * 1024 * 1024
    per_row = D * (18 * H + 8 * Hkv) + 64     # blocks (x2 buf) + scratch, bytes/row
    ts = 512
    while ts > 8 and ts * per_row > budget:
        ts //= 2
    if S <= ts:
        ts = _round_up(max(S, 1), 8)
    return max(ts, 8)


# ---------------------------------------------------------------------------
# Tiled matmul kernels (projections), bf16 operands, f32 accumulation
# ---------------------------------------------------------------------------
def _matmul_kernel_single(x_ref, w_ref, o_ref):
    o_ref[...] = jnp.dot(x_ref[...], w_ref[...],
                         preferred_element_type=jnp.float32).astype(o_ref.dtype)


def _matmul_kernel_acc(x_ref, w_ref, o_ref, acc_ref):
    @pl.when(pl.program_id(2) == 0)
    def _():
        acc_ref[...] = jnp.zeros(acc_ref.shape, acc_ref.dtype)

    acc_ref[...] += jnp.dot(x_ref[...], w_ref[...],
                            preferred_element_type=jnp.float32)

    @pl.when(pl.program_id(2) == pl.num_programs(2) - 1)
    def _():
        o_ref[...] = acc_ref[...].astype(o_ref.dtype)


def _matmul(x, w, out_dtype):
    M, K = x.shape
    Kw, N = w.shape
    assert K == Kw
    Mp = _round_up(M, 8)
    if Mp != M:
        x = jnp.pad(x, ((0, Mp - M), (0, 0)))

    tm = _pick_tile(Mp, (512, 256, 128, 64, 32, 16, 8))
    tn = _pick_tile(N, (512, 256, 128))
    tk = _pick_tile(K, (1024, 512))
    # Projection dims in Zamba2 are "nice"; fallbacks above are full-extent.

    if K // tk == 1:
        # Single-K-tile fast path: no accumulator scratch, no epilogue.
        out = pl.pallas_call(
            _matmul_kernel_single,
            out_shape=jax.ShapeDtypeStruct((Mp, N), out_dtype),
            grid_spec=pltpu.PrefetchScalarGridSpec(
                num_scalar_prefetch=0,
                grid=(Mp // tm, N // tn),
                in_specs=[
                    pl.BlockSpec((tm, K), lambda i, j: (i, 0)),
                    pl.BlockSpec((K, tn), lambda i, j: (0, j)),
                ],
                out_specs=pl.BlockSpec((tm, tn), lambda i, j: (i, j)),
            ),
            compiler_params=pltpu.CompilerParams(
                dimension_semantics=("parallel", "parallel")),
        )(x, w)
    else:
        out = pl.pallas_call(
            _matmul_kernel_acc,
            out_shape=jax.ShapeDtypeStruct((Mp, N), out_dtype),
            grid_spec=pltpu.PrefetchScalarGridSpec(
                num_scalar_prefetch=0,
                grid=(Mp // tm, N // tn, K // tk),
                in_specs=[
                    pl.BlockSpec((tm, tk), lambda i, j, k: (i, k)),
                    pl.BlockSpec((tk, tn), lambda i, j, k: (k, j)),
                ],
                out_specs=pl.BlockSpec((tm, tn), lambda i, j, k: (i, j)),
                scratch_shapes=[pltpu.VMEM((tm, tn), jnp.float32)],
            ),
            compiler_params=pltpu.CompilerParams(
                dimension_semantics=("parallel", "parallel", "arbitrary")),
        )(x, w)
    return out[:M] if Mp != M else out


# ---------------------------------------------------------------------------
# K/V prep kernel: RoPE(K) once + bf16 cast of K and V
# ---------------------------------------------------------------------------
def _make_kv_prep_kernel(Hkv, D):
    half = D // 2

    def kernel(kv_ref, pos_ref, inv_ref, k_ref, v_ref):
        f = pos_ref[0] * inv_ref[...]                     # (ts, half)
        cos_f = jnp.cos(f)
        sin_f = jnp.sin(f)
        for h in range(Hkv):
            x = kv_ref[0, :, h, :].astype(jnp.float32)    # (ts, D)  K head h
            x1 = x[:, :half]
            x2 = x[:, half:]
            # rotate_half semantics: out = [x1*c - x2*s, x2*c + x1*s]
            k_ref[0, :, h, :half] = (x1 * cos_f - x2 * sin_f).astype(k_ref.dtype)
            k_ref[0, :, h, half:] = (x2 * cos_f + x1 * sin_f).astype(k_ref.dtype)
            v_ref[0, :, h, :] = kv_ref[0, :, Hkv + h, :].astype(v_ref.dtype)

    return kernel


def _rope_kv_prep(kv, pos3, inv2, ts, out_dtype=jnp.bfloat16):
    B, S_pad, two_hkv, D = kv.shape
    Hkv = two_hkv // 2
    half = D // 2
    kernel = _make_kv_prep_kernel(Hkv, D)
    return pl.pallas_call(
        kernel,
        out_shape=(jax.ShapeDtypeStruct((B, S_pad, Hkv, D), out_dtype),
                   jax.ShapeDtypeStruct((B, S_pad, Hkv, D), out_dtype)),
        grid_spec=pltpu.PrefetchScalarGridSpec(
            num_scalar_prefetch=0,
            grid=(B, S_pad // ts),
            in_specs=[
                pl.BlockSpec((1, ts, 2 * Hkv, D), lambda b, si: (b, si, 0, 0)),
                pl.BlockSpec((1, ts, 1), lambda b, si: (b, si, 0)),
                pl.BlockSpec((1, half), lambda b, si: (0, 0)),
            ],
            out_specs=[
                pl.BlockSpec((1, ts, Hkv, D), lambda b, si: (b, si, 0, 0)),
                pl.BlockSpec((1, ts, Hkv, D), lambda b, si: (b, si, 0, 0)),
            ],
        ),
        compiler_params=pltpu.CompilerParams(
            dimension_semantics=("parallel", "parallel")),
    )(kv, pos3, inv2)


# ---------------------------------------------------------------------------
# Flash attention kernel (all heads per step, in-kernel causal mask,
# Q-RoPE hoisted to ki==0, bf16 MXU operands, f32 online softmax)
# ---------------------------------------------------------------------------
def _make_flash_kernel(H, Hkv, D, tq, tk, scale, seq_len, seq_len_pad,
                       causal, mxu_dtype):
    groups = H // Hkv
    half = D // 2
    need_len_mask = seq_len_pad > seq_len

    def kernel(q_ref, k_ref, v_ref, pos_ref, inv_ref, o_ref,
               q_sc, m_sc, l_sc, acc_sc):
        qi = pl.program_id(1)
        ki = pl.program_id(2)

        @pl.when(ki == 0)
        def _init():
            m_sc[...] = jnp.full(m_sc.shape, -jnp.inf, m_sc.dtype)
            l_sc[...] = jnp.zeros(l_sc.shape, l_sc.dtype)
            acc_sc[...] = jnp.zeros(acc_sc.shape, acc_sc.dtype)
            # Q RoPE computed once per (b, q-tile); cos/sin never hit HBM and
            # the softmax scale is folded into them for free.
            f = pos_ref[0] * inv_ref[...]                 # (tq, half)
            cos_f = jnp.cos(f) * scale
            sin_f = jnp.sin(f) * scale
            for h in range(H):
                x = q_ref[0, :, h, :].astype(jnp.float32)  # (tq, D)
                x1 = x[:, :half]
                x2 = x[:, half:]
                q_sc[h, :, :half] = (x1 * cos_f - x2 * sin_f).astype(q_sc.dtype)
                q_sc[h, :, half:] = (x2 * cos_f + x1 * sin_f).astype(q_sc.dtype)

        def _compute():
            valid = None
            if causal or need_len_mask:
                rows = jax.lax.broadcasted_iota(jnp.int32, (tq, tk), 0) + qi * tq
                cols = jax.lax.broadcasted_iota(jnp.int32, (tq, tk), 1) + ki * tk
                if need_len_mask:
                    valid = cols < seq_len
                if causal:
                    c = cols <= rows
                    valid = c if valid is None else jnp.logical_and(valid, c)
            for g in range(Hkv):
                kg = k_ref[0, :, g, :]                    # (tk, D) bf16
                vg = v_ref[0, :, g, :]                    # (tk, D) bf16
                for j in range(groups):
                    h = g * groups + j
                    s = jax.lax.dot_general(
                        q_sc[h], kg, (((1,), (1,)), ((), ())),
                        preferred_element_type=jnp.float32)   # (tq, tk)
                    if valid is not None:
                        s = jnp.where(valid, s, -1e30)
                    m_prev = m_sc[h]
                    m_new = jnp.maximum(m_prev, s.max(axis=-1, keepdims=True))
                    alpha = jnp.exp(m_prev - m_new)
                    p = jnp.exp(s - m_new)
                    l_sc[h] = alpha * l_sc[h] + p.sum(axis=-1, keepdims=True)
                    acc_sc[h] = alpha * acc_sc[h] + jnp.dot(
                        p.astype(mxu_dtype), vg,
                        preferred_element_type=jnp.float32)
                    m_sc[h] = m_new

        if causal:
            # Skip KV tiles that lie entirely above the diagonal.
            @pl.when(ki * tk <= qi * tq + (tq - 1))
            def _():
                _compute()
        else:
            _compute()

        @pl.when(ki == pl.num_programs(2) - 1)
        def _fin():
            for h in range(H):
                o_ref[0, :, h, :] = (
                    acc_sc[h] * pl.reciprocal(l_sc[h], approx=True)
                ).astype(o_ref.dtype)

    return kernel


def _flash_attention(q, k, v, pos3, inv2, scale, seq_len, causal, ts):
    B, S_pad, H, D = q.shape
    Hkv = k.shape[2]
    half = D // 2
    kernel = _make_flash_kernel(H, Hkv, D, ts, ts, scale, seq_len, S_pad,
                                causal, jnp.bfloat16)
    return pl.pallas_call(
        kernel,
        out_shape=jax.ShapeDtypeStruct((B, S_pad, H, D), jnp.bfloat16),
        grid_spec=pltpu.PrefetchScalarGridSpec(
            num_scalar_prefetch=0,
            grid=(B, S_pad // ts, S_pad // ts),
            in_specs=[
                pl.BlockSpec((1, ts, H, D), lambda b, qi, ki: (b, qi, 0, 0)),
                pl.BlockSpec((1, ts, Hkv, D), lambda b, qi, ki: (b, ki, 0, 0)),
                pl.BlockSpec((1, ts, Hkv, D), lambda b, qi, ki: (b, ki, 0, 0)),
                pl.BlockSpec((1, ts, 1), lambda b, qi, ki: (b, qi, 0)),
                pl.BlockSpec((1, half), lambda b, qi, ki: (0, 0)),
            ],
            out_specs=pl.BlockSpec((1, ts, H, D),
                                   lambda b, qi, ki: (b, qi, 0, 0)),
            scratch_shapes=[
                pltpu.VMEM((H, ts, D), jnp.bfloat16),   # rotated, scaled Q
                pltpu.VMEM((H, ts, 1), jnp.float32),    # running max
                pltpu.VMEM((H, ts, 1), jnp.float32),    # running denom
                pltpu.VMEM((H, ts, D), jnp.float32),    # output accumulator
            ],
        ),
        compiler_params=pltpu.CompilerParams(
            dimension_semantics=("parallel", "parallel", "arbitrary")),
    )(q, k, v, pos3, inv2)


# ---------------------------------------------------------------------------
# Zamba2Attention wrapper
# ---------------------------------------------------------------------------
class Zamba2AttentionPallas:
    def __init__(self, config: Zamba2Config, layer_idx: int = 0, key=None):
        self.config = config
        self.layer_idx = layer_idx
        self.hidden_size = config.hidden_size
        self.num_heads = config.num_attention_heads
        self.head_dim = 2 * self.hidden_size // self.num_heads
        self.num_key_value_heads = config.num_key_value_heads
        self.num_key_value_groups = self.num_heads // self.num_key_value_heads
        if self.head_dim * self.num_heads != 2 * self.hidden_size:
            raise ValueError("hidden_size must be divisible by num_heads")

        base = config.rope_theta
        if config.use_long_context:
            a = 16
            base = base * a ** (self.head_dim / (self.head_dim - 2))
        if config.use_mem_rope:
            exponents = (jnp.arange(0, self.head_dim, 2, dtype=jnp.float32)
                         / self.head_dim)
            self.inv_freq = (1.0 / (base ** exponents)).astype(jnp.float32)
        else:
            # inv_freq == 0 -> cos=1, sin=0 -> RoPE becomes the identity.
            self.inv_freq = jnp.zeros((self.head_dim // 2,), jnp.float32)

        if key is None:
            key = jax.random.PRNGKey(0)
        kq, kk, kv, ko = jax.random.split(key, 4)
        in_dim = 2 * self.hidden_size

        def _init(k, fan_in, fan_out):
            return (jax.random.normal(k, (fan_in, fan_out), jnp.float32)
                    / math.sqrt(fan_in))

        # f32 master weights (used by the pure-JAX reference)
        self.w_q = _init(kq, in_dim, self.num_heads * self.head_dim)
        self.w_k = _init(kk, in_dim, self.num_key_value_heads * self.head_dim)
        self.w_v = _init(kv, in_dim, self.num_key_value_heads * self.head_dim)
        self.w_o = _init(ko, self.num_heads * self.head_dim, self.hidden_size)

        # bf16 kernel weights; QKV fused along N -> hidden read once.
        self.w_qkv_bf16 = jnp.concatenate(
            [self.w_q, self.w_k, self.w_v], axis=1).astype(jnp.bfloat16)
        self.w_o_bf16 = self.w_o.astype(jnp.bfloat16)

    def __call__(self, hidden_states, position_ids, causal=True):
        B, S, F = hidden_states.shape
        H, Hkv, D = self.num_heads, self.num_key_value_heads, self.head_dim

        # TODO(synk): use_shared_attention_lora, HybridMambaAttentionDynamicCache
        # update (decode: Q and K positions diverge), attention dropout
        # (training-only) and arbitrary additive attention masks are not
        # implemented; causal=True reproduces the standard causal-mask path.

        ts = _choose_seq_tile(S, H, Hkv, D)
        S_pad = _round_up(S, ts)
        if S_pad != S:
            hidden_states_p = jnp.pad(hidden_states,
                                      ((0, 0), (0, S_pad - S), (0, 0)))
            position_ids_p = jnp.pad(position_ids, ((0, 0), (0, S_pad - S)))
        else:
            hidden_states_p, position_ids_p = hidden_states, position_ids

        # Fused QKV projection (bf16 MXU operands, f32 out).
        x2d = hidden_states_p.reshape(B * S_pad, F).astype(jnp.bfloat16)
        qkv = _matmul(x2d, self.w_qkv_bf16, out_dtype=jnp.float32)
        q = qkv[:, :H * D].reshape(B, S_pad, H, D)          # free reshape
        kv = qkv[:, H * D:].reshape(B, S_pad, 2 * Hkv, D)   # free reshape

        pos3 = position_ids_p.astype(jnp.float32).reshape(B, S_pad, 1)
        inv2 = self.inv_freq.reshape(1, D // 2)

        # K RoPE once + bf16 K/V.
        k_rot, v_b = _rope_kv_prep(kv, pos3, inv2, ts)

        scale = 1.0 / math.sqrt(D / 2)
        attn = _flash_attention(q, k_rot, v_b, pos3, inv2, scale,
                                seq_len=S, causal=causal, ts=ts)

        # (B, S_pad, H, D) bf16 -> (B*S_pad, H*D) is a free reshape.
        out = _matmul(attn.reshape(B * S_pad, H * D), self.w_o_bf16,
                      out_dtype=hidden_states.dtype)
        out = out.reshape(B, S_pad, self.hidden_size)
        return out[:, :S, :] if S_pad != S else out


# ---------------------------------------------------------------------------
# Pure-JAX reference (mirrors the PyTorch forward, f32)
# ---------------------------------------------------------------------------
def _reference_forward(hs, position_ids, mask, attn: Zamba2AttentionPallas):
    B, S, _ = hs.shape
    H, Hkv, D = attn.num_heads, attn.num_key_value_heads, attn.head_dim
    groups = attn.num_key_value_groups

    x2d = hs.reshape(B * S, -1)
    q = (x2d @ attn.w_q).reshape(B, S, H, D).transpose(0, 2, 1, 3)
    k = (x2d @ attn.w_k).reshape(B, S, Hkv, D).transpose(0, 2, 1, 3)
    v = (x2d @ attn.w_v).reshape(B, S, Hkv, D).transpose(0, 2, 1, 3)

    pos = position_ids.astype(jnp.float32)
    freqs = pos[:, :, None] * attn.inv_freq[None, None, :]
    emb = jnp.concatenate([freqs, freqs], axis=-1)
    cos = jnp.cos(emb)[:, None, :, :]
    sin = jnp.sin(emb)[:, None, :, :]

    def rot_half(x):
        h = x.shape[-1] // 2
        return jnp.concatenate([-x[..., h:], x[..., :h]], axis=-1)

    q = q * cos + rot_half(q) * sin
    k = k * cos + rot_half(k) * sin

    k = jnp.repeat(k, groups, axis=1)
    v = jnp.repeat(v, groups, axis=1)

    s = jnp.einsum("bhqd,bhkd->bhqk", q, k) / math.sqrt(D / 2)
    if mask is not None:
        s = s + mask
    p = jax.nn.softmax(s.astype(jnp.float32), axis=-1)
    o = jnp.einsum("bhqk,bhkd->bhqd", p, v)
    o = o.transpose(0, 2, 1, 3).reshape(B * S, H * D)
    return (o @ attn.w_o).reshape(B, S, attn.hidden_size)


# ---------------------------------------------------------------------------
if __name__ == "__main__":
    key = jax.random.PRNGKey(0)

    cfg = Zamba2Config(hidden_size=32, num_attention_heads=4,
                       num_key_value_heads=2, use_mem_rope=True)
    attn = Zamba2AttentionPallas(cfg, layer_idx=0,
                                 key=jax.random.fold_in(key, 1))

    # Second case has S not a multiple of 8 to exercise the padding/mask path.
    for idx, (B, S) in enumerate([(2, 8), (2, 12)]):
        hs = jax.random.normal(jax.random.fold_in(key, 100 + idx),
                               (B, S, 2 * cfg.hidden_size), jnp.float32)
        pos = jnp.broadcast_to(jnp.arange(S, dtype=jnp.int32)[None, :], (B, S))

        out = jax.block_until_ready(attn(hs, pos, causal=True))
        assert out.shape == (B, S, cfg.hidden_size)
        assert out.dtype == hs.dtype

        causal = jnp.tril(jnp.ones((S, S), dtype=bool))
        mask = jnp.broadcast_to(
            jnp.where(causal, 0.0, -1e9).astype(jnp.float32)[None, None],
            (B, 1, S, S))
        ref = _reference_forward(hs, pos, mask, attn)

        diff = out - ref
        rel = float(jnp.linalg.norm(diff) / jnp.linalg.norm(ref))
        mx = float(jnp.max(jnp.abs(diff)))
        # bf16 MXU operands vs f32 reference -> small mixed-precision error.
        assert rel < 2.5e-2 and mx < 1.0e-1, (rel, mx)

    print("KERNEL_OK")
</pallas_src>

<mosaic_0001>
module attributes {stable_mosaic.version = 11 : i64} {
  func.func @_matmul_kernel_single(%arg0: i32, %arg1: i32, %arg2: memref<16x64xbf16, #tpu.memory_space<vmem>>, %arg3: memref<64x128xbf16, #tpu.memory_space<vmem>>, %arg4: memref<16x128xf32, #tpu.memory_space<vmem>>) attributes {dimension_semantics = [#tpu.dimension_semantics<parallel>, #tpu.dimension_semantics<parallel>], iteration_bounds = array<i64: 1, 1>, scalar_prefetch = 0 : i64, scratch_operands = 0 : i64, tpu.core_type = #tpu.core_type<tc>, window_params = [{transform_indices = @transform_0, window_bounds = array<i64: 16, 64>}, {transform_indices = @transform_1, window_bounds = array<i64: 64, 128>}, {transform_indices = @transform_2, window_bounds = array<i64: 16, 128>}]} {
    %c0 = arith.constant 0 : index
    %c0_0 = arith.constant 0 : index
    %0 = vector.load %arg2[%c0, %c0_0] : memref<16x64xbf16, #tpu.memory_space<vmem>>, vector<16x64xbf16>
    %c0_1 = arith.constant 0 : index
    %c0_2 = arith.constant 0 : index
    %1 = vector.load %arg3[%c0_1, %c0_2] : memref<64x128xbf16, #tpu.memory_space<vmem>>, vector<64x128xbf16>
    %cst = arith.constant dense<0.000000e+00> : vector<16x128xf32>
    %2 = tpu.matmul %0, %1, %cst {dimension_numbers = #tpu.dot_dimension_numbers<[1], [0], [0], [1], [0, 0, 1, 1], [], []>} : vector<16x64xbf16>, vector<64x128xbf16>, vector<16x128xf32> -> vector<16x128xf32>
    %c0_3 = arith.constant 0 : index
    %c0_4 = arith.constant 0 : index
    %3 = vector.load %arg4[%c0_3, %c0_4] : memref<16x128xf32, #tpu.memory_space<vmem>>, vector<16x128xf32>
    tpu.vector_store %arg4[%c0_3, %c0_4], %2 {strides = array<i32>} : memref<16x128xf32, #tpu.memory_space<vmem>>, vector<16x128xf32>,
    return
  }
  func.func @transform_0(%arg0: i32, %arg1: i32) -> (i32, i32) {
    %c0_i32 = arith.constant 0 : i32
    %c0_i32_0 = arith.constant 0 : i32
    return %arg0, %c0_i32 : i32, i32
  }
  func.func @transform_1(%arg0: i32, %arg1: i32) -> (i32, i32) {
    %c0_i32 = arith.constant 0 : i32
    %c0_i32_0 = arith.constant 0 : i32
    return %c0_i32, %arg1 : i32, i32
  }
  func.func @transform_2(%arg0: i32, %arg1: i32) -> (i32, i32) {
    %c0_i32 = arith.constant 0 : i32
    return %arg0, %arg1 : i32, i32
  }
}

</mosaic_0001>

<bundles_post_ra>
// kernel: tpu_custom_call.1
= control target key start
LH: loop header
LB: loop body
LE: loop exit
PB: predicated region body
PF: predicated region fallthrough
CT: control target
= control target key end

     0   :  { %7 = vsyncpa [#allocation3], 0  ;;  %s314_s0 = inlined_call_operand.hbm [shape: bf16[16,64], index: 0, kind: input, shape index: {}]   ;;  %s315_s1 = inlined_call_operand.hbm [shape: bf16[64,128], index: 1, kind: input, shape index: {}]   ;;  %s316_s2 = inlined_call_operand.hbm [shape: f32[16,128], index: 2, kind: output, shape index: {}]  }
   0x1   :  { %8 = vsyncpa [#allocation6], 0 }
   0x2   :  { %9 = vsyncpa [#allocation4], 0  ;;  %s254_s9 = smov [#allocation2]   ;;  %s182_s13 = scalar_lea.hbm %s314_s0, 128 }
   0x3   :  { %s15_s10 = sshll.u32 %s254_s9, 4  ;;  %p183_p0 = scmp.ne.s32.totalorder %s314_s0, %s182_s13  ;;  %s16_s10 = int_to_ptr.vmem [resolvable:$true] %s15_s10 }
   0x4   :  { %p186_p1 = scmp.lt.u32.totalorder %s182_s13, %s314_s0 }
   0x6   :  { %p188_p2 = pnand %p186_p1, %p183_p0 }
   0x8   :  { %191 = shalt.err (!%p188_p2)
}
   0x9   :  { %s192_s18 = scalar_lea.vmem %s16_s10, 128  ;;  %p197_p4 = scmp.lt.s32.totalorder %s16_s10, %s16_s10 }
   0xa   :  { %p193_p3 = scmp.ne.s32.totalorder %s16_s10, %s192_s18  ;;  %p198_p5 = scmp.lt.s32.totalorder %s192_s18, %s192_s18 }
   0xc   :  { %p199_p6 = por %p198_p5, %p197_p4 }
   0xe   :  { %p200_p7 = pnand %p199_p6, %p193_p3 }
  0x10   :  { %203 = shalt.err (!%p200_p7)
}
  0x11   :  { %s255_s19 = smov 64   ;;  %s256_s20 = smov 4  }
  0x12   :  { %21 = dma.hbm_to_vmem [thread:$0]  %s314_s0, 128, %s16_s10, [#allocation3], %s255_s19, %s255_s19, %s256_s20  }
  0x13   :  { %s257_s23 = smov [#allocation5]   ;;  %s204_s27 = scalar_lea.hbm %s315_s1, 512 }
  0x14   :  { %s27_s24 = sshll.u32 %s257_s23, 4  ;;  %p205_p8 = scmp.ne.s32.totalorder %s315_s1, %s204_s27  ;;  %s28_s24 = int_to_ptr.vmem [resolvable:$true] %s27_s24 }
  0x15   :  { %p208_p9 = scmp.lt.u32.totalorder %s204_s27, %s315_s1 }
  0x17   :  { %p210_p10 = pnand %p208_p9, %p205_p8 }
  0x19   :  { %213 = shalt.err (!%p210_p10)
}
  0x1a   :  { %s214_s4 = scalar_lea.vmem %s28_s24, 512  ;;  %p219_p12 = scmp.lt.s32.totalorder %s28_s24, %s28_s24 }
  0x1b   :  { %p215_p11 = scmp.ne.s32.totalorder %s28_s24, %s214_s4  ;;  %p220_p13 = scmp.lt.s32.totalorder %s214_s4, %s214_s4 }
  0x1d   :  { %p221_p0 = por %p220_p13, %p219_p12 }
  0x1f   :  { %p222_p1 = pnand %p221_p0, %p215_p11 }
  0x21   :  { %225 = shalt.err (!%p222_p1)
}
  0x22   :  { %33 = dma.hbm_to_vmem [thread:$0]  %s315_s1, 512, %s28_s24, [#allocation6], %s255_s19, %s255_s19, %s256_s20  }
  0x23   :  { %248 = dma.done.wait [#allocation3], 128  }
  0x24   :  { %249 = vsyncadd [#allocation3], 4294967168 }
  0x25   :  { %250 = dma.done.wait [#allocation6], 512  }
  0x26   :  { %251 = vsyncadd [#allocation6], 4294966784  ;;  %v258_v0 = vmov 0.0   ;;  %vm259_vm0 = vmmov 0   ;;  %v177_v1 = vld [vmem:[#allocation5] sm:$0xff]   ;;  %v178_v2 = vld [vmem:[#allocation5 + $0x8] sm:$0xff]  }
  0x27   :  { %156 = vmatprep.subr.bf16.mxu0 %v258_v0  ;;  %164 = vmatprep.mubr.msk.bf16.mxu0 %vm259_vm0, %v258_v0  ;;  %v179_v3 = vld [vmem:[#allocation5 + $0x10] sm:$0xff]   ;;  %v180_v4 = vld [vmem:[#allocation5 + $0x18] sm:$0xff]   ;;  %vm80_vm1 = vcmask 523264   ;;  %s260_s1 = smov [#allocation7]  }
  0x28   :  { %157 = vmatpush3.bf16.msra.mxu0 %v177_v1  ;;  %v181_v5 = vld [vmem:[#allocation2] sm:$0xff]   ;;  %s132_s6 = sshll.u32 %s260_s1, 4  ;;  %s133_s6 = int_to_ptr.vmem [resolvable:$true] %s132_s6 }
  0x29   :  { %158 = vmatprep.subr.bf16.mxu0 %v258_v0  ;;  %s226_s7 = scalar_lea.vmem %s133_s6, 256  ;;  %p231_p3 = scmp.lt.s32.totalorder %s133_s6, %s133_s6 }
  0x2a   :  { %p227_p2 = scmp.ne.s32.totalorder %s133_s6, %s226_s7  ;;  %p232_p4 = scmp.lt.s32.totalorder %s226_s7, %s226_s7 }
  0x2c   :  { %159 = vmatpush3.bf16.msra.mxu0 %v178_v2  ;;  %p233_p5 = por %p232_p4, %p231_p3 }
  0x2d   :  { %160 = vmatprep.subr.bf16.mxu0 %v258_v0 }
  0x2e   :  { %p234_p6 = pnand %p233_p5, %p227_p2 }
  0x30   :  { %161 = vmatpush3.bf16.msra.mxu0 %v179_v3 }
  0x31   :  { %162 = vmatprep.subr.bf16.mxu0 %v258_v0 }
  0x34   :  { %163 = vmatpush3.bf16.msra.mxu0 %v180_v4 }
  0x37   :  { %165 = vmatmul.mubr.msk.bf16.vlgmr.msra.gmra.mrb[0].mxu0 %vm80_vm1, %v181_v5 }
 0x10a   :  { %v118_v6 = vpop.f32.mrb[0].mxu0 }
 0x10b   :  { %125 = vst [vmem:[#allocation7] sm:$0xff] %v118_v6  ;;  %v166_v7 = vpop.f32.mrb[1].mxu0 }
 0x10c   :  { %v121_v8 = vpop.f32.mrb[2].mxu0 }
 0x10d   :  { %126 = vst [vmem:[#allocation7 + $0x8] sm:$0xff] %v121_v8  ;;  %v167_v9 = vpop.f32.mrb[3].mxu0 }
 0x10e   :  { %237 = shalt.err (!%p234_p6)
}
 0x10f   :  { %s238_s10 = scalar_lea.hbm %s316_s2, 256 }
 0x110   :  { %p239_p7 = scmp.ne.s32.totalorder %s316_s2, %s238_s10  ;;  %p242_p8 = scmp.lt.u32.totalorder %s238_s10, %s316_s2 }
 0x112   :  { %p244_p9 = pnand %p242_p8, %p239_p7 }
 0x114   :  { %247 = shalt.err (!%p244_p9)
}
 0x115   :  { %s261_s15 = smov 128   ;;  %s262_s16 = smov 8  }
 0x116   :  { %138 = dma.vmem_to_hbm [thread:$0]  %s133_s6, 256, %s316_s2, [#allocation4], %s261_s15, %s261_s15, %s262_s16  }
 0x117   :  { %252 = dma.done.wait [#allocation4], 256  }
 0x118   :  { %253 = vsyncadd [#allocation4], 4294967040 }
 0x119   :  { %142 = vsyncpa [#allocation3], 1 }
 0x11a   :  { %143 = vsyncpa [#allocation6], 1 }
 0x11b   :  { %144 = vsyncpa [#allocation4], 1 }

</bundles_post_ra>
